<compile_context>
chip_gen: v7x
topology: tpu7x:2x2x1
jax: 0.10.0
libtpu: 0.0.40
codegen_flags: <defaults>
</compile_context>

<pallas_src>
import functools

import jax
import jax.numpy as jnp
from jax.experimental import pallas as pl
from jax.experimental.pallas import tpu as pltpu


def _head_kernel(x_ref, wqkv_ref, o_ref, *, scale, head_size, compute_dtype):
    # x_ref:    (Bb, T, C)   block of Bb batch rows
    # wqkv_ref: (C, 3H)      fused [Wq^T | Wk^T | Wv^T], resident across the grid
    # o_ref:    (Bb, T, H)
    Bb, T, C = x_ref.shape
    H = head_size

    x = x_ref[...].astype(compute_dtype)      # (Bb, T, C)
    w = wqkv_ref[...].astype(compute_dtype)   # (C, 3H)

    # Single fused QKV projection: flatten (Bb, T) into one M dimension for the MXU.
    x2 = x.reshape(Bb * T, C)
    qkv = jnp.dot(x2, w, preferred_element_type=jnp.float32)        # (Bb*T, 3H) f32

    # Fold the softmax scale into q (T*H multiplies instead of T*T).
    q = qkv[:, 0 * H:1 * H].reshape(Bb, T, H) * jnp.float32(scale)
    k = qkv[:, 1 * H:2 * H].reshape(Bb, T, H)
    v = qkv[:, 2 * H:3 * H].reshape(Bb, T, H)

    # Attention scores, batched over the Bb rows of this block.
    wei = jnp.einsum(
        "bqh,bkh->bqk",
        q.astype(compute_dtype), k.astype(compute_dtype),
        preferred_element_type=jnp.float32,
    )                                                               # (Bb, T, T) f32

    # Causal mask generated in-kernel (row >= col). Large finite negative instead of -inf
    # so an all-masked row can never produce NaN.
    row = jax.lax.broadcasted_iota(jnp.int32, (T, T), 0)
    col = jax.lax.broadcasted_iota(jnp.int32, (T, T), 1)
    wei = jnp.where((row >= col)[None, :, :], wei, jnp.float32(-1e30))

    # Numerically stable softmax. Reciprocal goes to the EUP (approx=True); two Newton
    # refinement steps on the tiny (Bb, T, 1) denominator restore full f32 accuracy.
    m = jnp.max(wei, axis=-1, keepdims=True)
    e = jnp.exp(wei - m)
    denom = jnp.sum(e, axis=-1, keepdims=True)
    r = pl.reciprocal(denom, approx=True)
    r = r * (2.0 - denom * r)
    r = r * (2.0 - denom * r)
    p = e * r

    out = jnp.einsum(
        "bqk,bkh->bqh",
        p.astype(compute_dtype), v.astype(compute_dtype),
        preferred_element_type=jnp.float32,
    )                                                               # (Bb, T, H) f32
    o_ref[...] = out.astype(o_ref.dtype)


def _batch_block(B, T):
    """Pick a batch block size (divisor of B): enough rows (~256) to fill the MXU M dim,
    capped so the per-step working set stays modest."""
    target = max(1, (256 + T - 1) // T)
    cap = max(1, 4096 // max(T, 1))
    best = 1
    for d in range(1, B + 1):
        if B % d == 0 and d <= cap:
            best = d
            if d >= target:
                break
    return best


def head_forward(x, w_key, w_query, w_value, tril=None, *, compute_dtype=None):
    """Single-head causal self-attention (eval mode), matching PyTorch Head.forward.

    Args:
      x:                      (B, T, C) input.
      w_key/w_query/w_value:  (H, C) nn.Linear weights (out_features, in_features), no bias.
      tril:                   unused; the causal mask is generated in-kernel (kept for API parity).
      compute_dtype:          MXU operand dtype (e.g. jnp.bfloat16 on v6e/v7x). Defaults to x.dtype.
    Returns:
      (B, T, H) array with the dtype of x.
    """
    del tril  # causal mask built in-kernel (row >= col); no (T,T) DMA needed.
    B, T, C = x.shape
    H = w_key.shape[0]
    scale = float(C) ** (-0.5)  # module scales by n_embeddings ** -0.5
    if compute_dtype is None:
        compute_dtype = x.dtype

    # Fuse the three projections: one resident (C, 3H) weight, one in-kernel matmul.
    wqkv = jnp.concatenate(
        [jnp.asarray(w_query).T, jnp.asarray(w_key).T, jnp.asarray(w_value).T], axis=1)

    Bb = _batch_block(B, T)
    kernel = functools.partial(
        _head_kernel, scale=scale, head_size=H, compute_dtype=compute_dtype)

    return pl.pallas_call(
        kernel,
        out_shape=jax.ShapeDtypeStruct((B, T, H), x.dtype),
        grid_spec=pltpu.PrefetchScalarGridSpec(
            num_scalar_prefetch=0,
            grid=(B // Bb,),
            in_specs=[
                pl.BlockSpec((Bb, T, C), lambda b: (b, 0, 0)),    # x: Bb batch rows per step
                pl.BlockSpec((C, 3 * H), lambda b: (0, 0)),       # fused W_qkv, stays resident
            ],
            out_specs=pl.BlockSpec((Bb, T, H), lambda b: (b, 0, 0)),
        ),
        compiler_params=pltpu.CompilerParams(
            dimension_semantics=("parallel",)),
    )(x, wqkv)


def reference_forward(x, w_key, w_query, w_value, tril):
    """Pure-JAX reference mirroring the PyTorch forward (eval mode)."""
    B, T, C = x.shape
    k = x @ w_key.T
    q = x @ w_query.T
    v = x @ w_value.T
    wei = (q @ jnp.swapaxes(k, -2, -1)) * (C ** -0.5)
    mask = tril[:T, :T] == 0
    wei = jnp.where(mask[None, :, :], -jnp.inf, wei)
    wei = jax.nn.softmax(wei, axis=-1)
    return wei @ v


if __name__ == "__main__":
    # Small shapes consistent with the module: batch=2, seq=8, n_embeddings=32, head_size=16
    B, T, C, H = 2, 8, 32, 16
    context_size = 8
    dropout = 0.1  # unused (eval-mode semantics)

    key = jax.random.PRNGKey(0)
    kx, kk, kq, kv = jax.random.split(key, 4)

    x = jax.random.normal(kx, (B, T, C), dtype=jnp.float32)
    bound = 1.0 / (C ** 0.5)
    w_key = jax.random.uniform(kk, (H, C), minval=-bound, maxval=bound, dtype=jnp.float32)
    w_query = jax.random.uniform(kq, (H, C), minval=-bound, maxval=bound, dtype=jnp.float32)
    w_value = jax.random.uniform(kv, (H, C), minval=-bound, maxval=bound, dtype=jnp.float32)
    tril = jnp.tril(jnp.ones((context_size, context_size), dtype=jnp.float32))

    out = jax.block_until_ready(head_forward(x, w_key, w_query, w_value, tril))
    ref = reference_forward(x, w_key, w_query, w_value, tril)
    assert out.shape == (B, T, H), out.shape
    assert jnp.allclose(out, ref, atol=1e-5, rtol=1e-5), (
        "f32 kernel mismatch vs reference, max abs err = "
        f"{float(jnp.max(jnp.abs(out - ref)))}")

    # bf16-operand MXU path (recommended on v6e/v7x); f32 accumulation, looser tolerance.
    out_bf16 = jax.block_until_ready(
        head_forward(x, w_key, w_query, w_value, tril, compute_dtype=jnp.bfloat16))
    assert jnp.allclose(out_bf16, ref, atol=3e-2, rtol=3e-2), (
        "bf16 kernel mismatch vs reference, max abs err = "
        f"{float(jnp.max(jnp.abs(out_bf16 - ref)))}")

    print("KERNEL_OK")
</pallas_src>

<mosaic_0001>
module attributes {stable_mosaic.version = 11 : i64} {
  func.func @_head_kernel(%arg0: i32, %arg1: memref<2x8x32xf32, #tpu.memory_space<vmem>>, %arg2: memref<32x48xf32, #tpu.memory_space<vmem>>, %arg3: memref<2x8x16xf32, #tpu.memory_space<vmem>>) attributes {dimension_semantics = [#tpu.dimension_semantics<parallel>], iteration_bounds = array<i64: 1>, scalar_prefetch = 0 : i64, scratch_operands = 0 : i64, tpu.core_type = #tpu.core_type<tc>, window_params = [{transform_indices = @transform_0, window_bounds = array<i64: 2, 8, 32>}, {pipeline_mode = #tpu.pipeline_mode<synchronous>, transform_indices = @transform_1, window_bounds = array<i64: 32, 48>}, {transform_indices = @transform_2, window_bounds = array<i64: 2, 8, 16>}]} {
    %c0 = arith.constant 0 : index
    %c0_0 = arith.constant 0 : index
    %c0_1 = arith.constant 0 : index
    %0 = vector.load %arg1[%c0, %c0_0, %c0_1] : memref<2x8x32xf32, #tpu.memory_space<vmem>>, vector<2x8x32xf32>
    %c0_2 = arith.constant 0 : index
    %c0_3 = arith.constant 0 : index
    %1 = vector.load %arg2[%c0_2, %c0_3] : memref<32x48xf32, #tpu.memory_space<vmem>>, vector<32x48xf32>
    %2 = vector.shape_cast %0 : vector<2x8x32xf32> to vector<16x32xf32>
    %cst = arith.constant dense<0.000000e+00> : vector<16x48xf32>
    %3 = tpu.matmul %2, %1, %cst {dimension_numbers = #tpu.dot_dimension_numbers<[1], [0], [0], [1], [0, 0, 1, 1], [], []>} : vector<16x32xf32>, vector<32x48xf32>, vector<16x48xf32> -> vector<16x48xf32>
    %4 = vector.extract_strided_slice %3 {offsets = [0, 0], sizes = [16, 16], strides = [1, 1]} : vector<16x48xf32> to vector<16x16xf32>
    %5 = vector.shape_cast %4 : vector<16x16xf32> to vector<2x8x16xf32>
    %cst_4 = arith.constant 0.176776692 : f32
    %6 = vector.broadcast %cst_4 : f32 to vector<2x8x16xf32>
    %7 = arith.mulf %5, %6 : vector<2x8x16xf32>
    %8 = vector.extract_strided_slice %3 {offsets = [0, 16], sizes = [16, 16], strides = [1, 1]} : vector<16x48xf32> to vector<16x16xf32>
    %9 = vector.shape_cast %8 : vector<16x16xf32> to vector<2x8x16xf32>
    %10 = vector.extract_strided_slice %3 {offsets = [0, 32], sizes = [16, 16], strides = [1, 1]} : vector<16x48xf32> to vector<16x16xf32>
    %11 = vector.shape_cast %10 : vector<16x16xf32> to vector<2x8x16xf32>
    "tpu.trace_start"() <{level = 10 : i32, message = "bqh,bkh->bqk"}> : () -> ()
    %cst_5 = arith.constant dense<0.000000e+00> : vector<2x8x8xf32>
    %12 = tpu.matmul %7, %9, %cst_5 {dimension_numbers = #tpu.dot_dimension_numbers<[2], [2], [1], [1], [0, 0, 0, 1, 1, 1], [0], [0]>} : vector<2x8x16xf32>, vector<2x8x16xf32>, vector<2x8x8xf32> -> vector<2x8x8xf32>
    "tpu.trace_stop"() : () -> ()
    %13 = tpu.iota {dimensions = array<i32: 0>} : vector<8x8xi32>
    %14 = tpu.iota {dimensions = array<i32: 1>} : vector<8x8xi32>
    %15 = arith.cmpi sge, %13, %14 : vector<8x8xi32>
    %16 = vector.shape_cast %15 : vector<8x8xi1> to vector<1x8x8xi1>
    %cst_6 = arith.constant -1.000000e+30 : f32
    %17 = vector.shape_cast %16 : vector<1x8x8xi1> to vector<1x8x8xi1>
    %18 = vector.broadcast %17 : vector<1x8x8xi1> to vector<2x8x8xi1>
    %19 = vector.broadcast %cst_6 : f32 to vector<2x8x8xf32>
    %20 = arith.select %18, %12, %19 : vector<2x8x8xi1>, vector<2x8x8xf32>
    %cst_7 = arith.constant dense<0xFF800000> : vector<2x8xf32>
    %21 = vector.multi_reduction <maximumf>, %20, %cst_7 [2] : vector<2x8x8xf32> to vector<2x8xf32>
    %22 = vector.shape_cast %21 : vector<2x8xf32> to vector<2x8x1xf32>
    %23 = vector.broadcast %22 : vector<2x8x1xf32> to vector<2x8x8xf32>
    %24 = arith.subf %20, %23 : vector<2x8x8xf32>
    %25 = math.exp %24 : vector<2x8x8xf32>
    %cst_8 = arith.constant dense<0.000000e+00> : vector<2x8xf32>
    %26 = vector.multi_reduction <add>, %25, %cst_8 [2] : vector<2x8x8xf32> to vector<2x8xf32>
    %27 = vector.shape_cast %26 : vector<2x8xf32> to vector<2x8x1xf32>
    %28 = tpu.reciprocal %27 {approx = true} : vector<2x8x1xf32> -> vector<2x8x1xf32>
    %29 = arith.mulf %27, %28 : vector<2x8x1xf32>
    %cst_9 = arith.constant 2.000000e+00 : f32
    %30 = vector.broadcast %cst_9 : f32 to vector<2x8x1xf32>
    %31 = arith.subf %30, %29 : vector<2x8x1xf32>
    %32 = arith.mulf %28, %31 : vector<2x8x1xf32>
    %33 = arith.mulf %27, %32 : vector<2x8x1xf32>
    %cst_10 = arith.constant 2.000000e+00 : f32
    %34 = vector.broadcast %cst_10 : f32 to vector<2x8x1xf32>
    %35 = arith.subf %34, %33 : vector<2x8x1xf32>
    %36 = arith.mulf %32, %35 : vector<2x8x1xf32>
    %37 = vector.broadcast %36 : vector<2x8x1xf32> to vector<2x8x8xf32>
    %38 = arith.mulf %25, %37 : vector<2x8x8xf32>
    "tpu.trace_start"() <{level = 10 : i32, message = "bqk,bkh->bqh"}> : () -> ()
    %cst_11 = arith.constant dense<0.000000e+00> : vector<2x8x16xf32>
    %39 = tpu.matmul %38, %11, %cst_11 {dimension_numbers = #tpu.dot_dimension_numbers<[2], [1], [1], [2], [0, 0, 0, 1, 1, 2], [0], [0]>} : vector<2x8x8xf32>, vector<2x8x16xf32>, vector<2x8x16xf32> -> vector<2x8x16xf32>
    "tpu.trace_stop"() : () -> ()
    %c0_12 = arith.constant 0 : index
    %c0_13 = arith.constant 0 : index
    %c0_14 = arith.constant 0 : index
    %40 = vector.load %arg3[%c0_12, %c0_13, %c0_14] : memref<2x8x16xf32, #tpu.memory_space<vmem>>, vector<2x8x16xf32>
    tpu.vector_store %arg3[%c0_12, %c0_13, %c0_14], %39 {strides = array<i32>} : memref<2x8x16xf32, #tpu.memory_space<vmem>>, vector<2x8x16xf32>,
    return
  }
  func.func @transform_0(%arg0: i32) -> (i32, i32, i32) {
    %c0_i32 = arith.constant 0 : i32
    %c0_i32_0 = arith.constant 0 : i32
    %c0_i32_1 = arith.constant 0 : i32
    return %arg0, %c0_i32, %c0_i32_0 : i32, i32, i32
  }
  func.func @transform_1(%arg0: i32) -> (i32, i32) {
    %c0_i32 = arith.constant 0 : i32
    %c0_i32_0 = arith.constant 0 : i32
    %c0_i32_1 = arith.constant 0 : i32
    return %c0_i32, %c0_i32_0 : i32, i32
  }
  func.func @transform_2(%arg0: i32) -> (i32, i32, i32) {
    %c0_i32 = arith.constant 0 : i32
    %c0_i32_0 = arith.constant 0 : i32
    %c0_i32_1 = arith.constant 0 : i32
    return %arg0, %c0_i32, %c0_i32_0 : i32, i32, i32
  }
}

</mosaic_0001>

<bundles_post_ra>
// kernel: tpu_custom_call.1
= control target key start
LH: loop header
LB: loop body
LE: loop exit
PB: predicated region body
PF: predicated region fallthrough
CT: control target
= control target key end

     0   :  { %7 = vsyncpa [#allocation3], 0  ;;  %s738_s0 = inlined_call_operand.hbm [shape: f32[2,8,32], index: 0, kind: input, shape index: {}]   ;;  %s739_s1 = inlined_call_operand.hbm [shape: f32[32,48], index: 1, kind: input, shape index: {}]   ;;  %s740_s2 = inlined_call_operand.hbm [shape: f32[2,8,16], index: 2, kind: output, shape index: {}]  }
   0x1   :  { %8 = vsyncpa [#allocation6], 0 }
   0x2   :  { %9 = vsyncpa [#allocation4], 0  ;;  %s653_s9 = smov [#allocation2]   ;;  %s581_s13 = scalar_lea.hbm %s738_s0, 256 }
   0x3   :  { %s15_s10 = sshll.u32 %s653_s9, 4  ;;  %p582_p0 = scmp.ne.s32.totalorder %s738_s0, %s581_s13  ;;  %s16_s10 = int_to_ptr.vmem [resolvable:$true] %s15_s10 }
   0x4   :  { %p585_p1 = scmp.lt.u32.totalorder %s581_s13, %s738_s0 }
   0x6   :  { %p587_p2 = pnand %p585_p1, %p582_p0 }
   0x8   :  { %590 = shalt.err (!%p587_p2)
}
   0x9   :  { %s591_s18 = scalar_lea.vmem %s16_s10, 256  ;;  %p596_p4 = scmp.lt.s32.totalorder %s16_s10, %s16_s10 }
   0xa   :  { %p592_p3 = scmp.ne.s32.totalorder %s16_s10, %s591_s18  ;;  %p597_p5 = scmp.lt.s32.totalorder %s591_s18, %s591_s18 }
   0xc   :  { %p598_p6 = por %p597_p5, %p596_p4 }
   0xe   :  { %p599_p7 = pnand %p598_p6, %p592_p3 }
  0x10   :  { %602 = shalt.err (!%p599_p7)
}
  0x11   :  { %s654_s19 = smov 128   ;;  %s655_s20 = smov 8  }
  0x12   :  { %21 = dma.hbm_to_vmem [thread:$0]  %s738_s0, 256, %s16_s10, [#allocation3], %s654_s19, %s654_s19, %s655_s20  }
  0x13   :  { %s656_s23 = smov [#allocation5]   ;;  %s603_s27 = scalar_lea.hbm %s739_s1, 512 }
  0x14   :  { %s27_s24 = sshll.u32 %s656_s23, 4  ;;  %p604_p8 = scmp.ne.s32.totalorder %s739_s1, %s603_s27  ;;  %s28_s24 = int_to_ptr.vmem [resolvable:$true] %s27_s24 }
  0x15   :  { %p607_p9 = scmp.lt.u32.totalorder %s603_s27, %s739_s1 }
  0x17   :  { %p609_p10 = pnand %p607_p9, %p604_p8 }
  0x19   :  { %612 = shalt.err (!%p609_p10)
}
  0x1a   :  { %s613_s4 = scalar_lea.vmem %s28_s24, 512  ;;  %p618_p12 = scmp.lt.s32.totalorder %s28_s24, %s28_s24 }
  0x1b   :  { %p614_p11 = scmp.ne.s32.totalorder %s28_s24, %s613_s4  ;;  %p619_p13 = scmp.lt.s32.totalorder %s613_s4, %s613_s4 }
  0x1d   :  { %p620_p0 = por %p619_p13, %p618_p12 }
  0x1f   :  { %p621_p1 = pnand %p620_p0, %p614_p11 }
  0x21   :  { %624 = shalt.err (!%p621_p1)
}
  0x22   :  { %33 = dma.hbm_to_vmem [thread:$0]  %s739_s1, 512, %s28_s24, [#allocation6], %s654_s19, %s654_s19, %s655_s20  }
  0x23   :  { %647 = dma.done.wait [#allocation3], 256  }
  0x24   :  { %648 = vsyncadd [#allocation3], 4294967040 }
  0x25   :  { %649 = dma.done.wait [#allocation6], 512  }
  0x26   :  { %650 = vsyncadd [#allocation6], 4294966784  ;;  %vm46_vm0 = vcmask 261120   ;;  %v42_v0 = vld [vmem:[#allocation5] sm:$0xff]  ;;  %v43_v1 = vld [vmem:[#allocation5 + $0x8] sm:$0xff]  ;;  %v657_v8 = vmov 0.0   ;;  %v287_v15 = vlaneseq }
  0x27   :  { %v44_v2 = vld [vmem:[#allocation5 + $0x10] sm:$0xff]  ;;  %v556_v3 = vpack.c.bf16 %v43_v1, %v42_v0  ;;  %v45_v4 = vld [vmem:[#allocation5 + $0x18] sm:$0xff]  ;;  %536 = vmatprep.subr.mxu1 %v657_v8  ;;  %vm658_vm1 = vmmov 0   ;;  %s659_s1 = smov 112   ;;  %vm133_vm2 = vcmask 130048   ;;  %vm296_vm4 = vcmask 64512  }
  0x28   :  { %v40_v5 = vld [vmem:[#allocation2] sm:$0xff]  ;;  %v560_v6 = vpack.c.bf16 %v45_v4, %v44_v2  ;;  %v41_v7 = vld [vmem:[#allocation2 + $0x8] sm:$0xff]  ;;  %538 = vmatprep.mubr.msk.f32.mxu1 %vm658_vm1, %v657_v8  ;;  %v288_v16 = vshrl.u32 %v287_v15, 7  ;;  %v290_v17 = vand.u32 127, %v287_v15  ;;  %s660_s6 = smov 96   ;;  %s661_s7 = smov [#allocation7]  }
  0x29   :  { %533 = vmatprep.mubr.msk.f32.mxu0 %vm46_vm0, %v40_v5  ;;  %557 = vmatprep.subr.bf16.mxu0 %v556_v3  ;;  %s490_s8 = sshll.u32 %s661_s7, 4  ;;  %s491_s8 = int_to_ptr.vmem [resolvable:$true] %s490_s8 }
  0x2a   :  { %559 = vmatpush3.bf16.msra.mxu0 %v556_v3  ;;  %vm291_vm3 = vcmp.ge.s32.totalorder %v288_v16, %v290_v17  ;;  %s625_s9 = scalar_lea.vmem %s491_s8, 256  ;;  %p630_p3 = scmp.lt.s32.totalorder %s491_s8, %s491_s8 }
  0x2b   :  { %561 = vmatprep.subr.bf16.mxu0 %v560_v6  ;;  %p626_p2 = scmp.ne.s32.totalorder %s491_s8, %s625_s9  ;;  %p631_p4 = scmp.lt.s32.totalorder %s625_s9, %s625_s9 }
  0x2d   :  { %p632_p5 = por %p631_p4, %p630_p3 }
  0x2e   :  { %563 = vmatpush3.bf16.msra.mxu0 %v560_v6 }
  0x2f   :  { %546 = vmatprep.subr.mxu0 %v657_v8  ;;  %p633_p6 = pnand %p632_p5, %p626_p2 }
  0x31   :  { %534 = vmatmul.mubr.msk.f32.vlgmr.msra.gmra.mrb[0].mxu0 %vm46_vm0, %v41_v7 }
  0x32   :  { %548 = vmatprep.mubr.msk.f32.mxu0 %vm658_vm1, %v657_v8 }
 0x104   :  { %v535_v9 = vpop.f32.mrb[0].mxu0 }
 0x105   :  { %v119_v10 = vpop.f32.mrb[1].mxu0  ;;  %v129_v14 = vmul.f32 0.17677669, %v535_v9 }
 0x106   :  { %131 = vrot.lane.b32.xlu0 %v119_v10, %s659_s1  ;;  %v128_v12 = vmul.f32 0.17677669, %v119_v10 }
 0x10a   :  { %210 = vrot.lane.b32.xlu0 %v535_v9, %s659_s1 }
 0x178   :  { %v132_v11 = vpop.permute.xlu0 %131 }
 0x179   :  { %537 = vmatpush3.xpose.msk.msra.mxu1 %vm133_vm2, %v132_v11 }
 0x17a   :  { %541 = vmatprep.subr.mxu1 %v657_v8 }
 0x17c   :  { %v211_v13 = vpop.permute.xlu0 %210  ;;  %539 = vmatmul.mubr.msk.f32.vlgmr.msra.gmra.mrb[0].mxu1 %vm133_vm2, %v128_v12 }
 0x17d   :  { %542 = vmatpush3.xpose.msk.msra.mxu1 %vm133_vm2, %v211_v13  ;;  %543 = vmatprep.mubr.msk.f32.mxu1 %vm658_vm1, %v657_v8 }
 0x17e   :  { %551 = vmatprep.subr.mxu1 %v657_v8 }
 0x180   :  { %544 = vmatmul.mubr.msk.f32.vlgmr.msra.gmra.mrb[2].mxu1 %vm133_vm2, %v129_v14 }
 0x181   :  { %553 = vmatprep.mubr.msk.f32.mxu1 %vm658_vm1, %v657_v8 }
 0x24f   :  { %v205_v18 = vpop.f32.mrb[0].mxu1 }
 0x250   :  { %v294_v19 = vsel %vm291_vm3, %v205_v18, -1e+30  ;;  %v540_v20 = vpop.f32.mrb[1].mxu1 }
 0x251   :  { %v297_v21 = vsel %vm296_vm4, %v294_v19, -inf }
 0x252   :  { %298 = vmax.xlane.f32.xlu1 %v297_v21 }
 0x253   :  { %v283_v22 = vpop.f32.mrb[2].mxu1 }
 0x254   :  { %v295_v23 = vsel %vm291_vm3, %v283_v22, -1e+30  ;;  %v545_v24 = vpop.f32.mrb[3].mxu1 }
 0x255   :  { %v300_v25 = vsel %vm296_vm4, %v295_v23, -inf }
 0x256   :  { %301 = vmax.xlane.f32.xlu1 %v300_v25 }
 0x2df   :  { %v299_v26 = vpop.xlane.xlu1 %298 }
 0x2e0   :  { %v303_v27 = vsub.f32 %v294_v19, %v299_v26 }
 0x2e2   :  { %v305_v28 = vmul.f32 1.442695, %v303_v27 }
 0x2e3   :  { %v302_v29 = vpop.xlane.xlu1 %301 }
 0x2e4   :  { %573 = vpow2.f32 %v305_v28  ;;  %v304_v30 = vsub.f32 %v295_v23, %v302_v29 }
 0x2e6   :  { %v307_v31 = vmul.f32 1.442695, %v304_v30 }
 0x2e8   :  { %575 = vpow2.f32 %v307_v31 }
 0x2ee   :  { %v574_v32 = vpop.eup %573 }
 0x2ef   :  { %v309_v33 = vsel %vm296_vm4, %v574_v32, 0.0 }
 0x2f0   :  { %310 = vadd.xlane.f32.xlu0 %v309_v33 }
 0x2f2   :  { %v576_v34 = vpop.eup %575 }
 0x2f3   :  { %v312_v35 = vsel %vm296_vm4, %v576_v34, 0.0 }
 0x2f4   :  { %313 = vadd.xlane.f32.xlu1 %v312_v35 }
 0x305   :  { %331 = vrot.lane.b32.xlu1 %v119_v10, %s660_s6 }
 0x309   :  { %407 = vrot.lane.b32.xlu1 %v535_v9, %s660_s6 }
 0x37d   :  { %v311_v36 = vpop.xlane.xlu0 %310 }
 0x37e   :  { %577 = vrcp.f32 %v311_v36 }
 0x381   :  { %v314_v37 = vpop.xlane.xlu1 %313 }
 0x382   :  { %579 = vrcp.f32 %v314_v37 }
 0x385   :  { %v332_v38 = vpop.permute.xlu1 %331 }
 0x386   :  { %547 = vmatpush3.msra.mxu0 %v332_v38 }
 0x388   :  { %v578_v39 = vpop.eup %577 }
 0x389   :  { %v317_v40 = vmul.f32 %v578_v39, %v311_v36  ;;  %v408_v41 = vpop.permute.xlu1 %407 }
 0x38a   :  { %552 = vmatpush3.msra.mxu1 %v408_v41 }
 0x38b   :  { %v319_v42 = vsub.f32 2.0, %v317_v40 }
 0x38c   :  { %v580_v43 = vpop.eup %579 }
 0x38d   :  { %v321_v44 = vmul.f32 %v578_v39, %v319_v42  ;;  %v318_v45 = vmul.f32 %v580_v43, %v314_v37 }
 0x38f   :  { %v323_v46 = vmul.f32 %v321_v44, %v311_v36  ;;  %v320_v47 = vsub.f32 2.0, %v318_v45 }
 0x391   :  { %v325_v48 = vsub.f32 2.0, %v323_v46  ;;  %v322_v49 = vmul.f32 %v580_v43, %v320_v47 }
 0x393   :  { %v327_v50 = vmul.f32 %v325_v48, %v321_v44  ;;  %v324_v51 = vmul.f32 %v322_v49, %v314_v37 }
 0x395   :  { %v329_v52 = vmul.f32 %v574_v32, %v327_v50  ;;  %v326_v53 = vsub.f32 2.0, %v324_v51 }
 0x397   :  { %v328_v54 = vmul.f32 %v326_v53, %v322_v49  ;;  %549 = vmatmul.mubr.msk.f32.vlgmr.msra.gmra.mrb[2].mxu0 %vm296_vm4, %v329_v52 }
 0x399   :  { %v330_v55 = vmul.f32 %v576_v34, %v328_v54 }
 0x39b   :  { %554 = vmatmul.mubr.msk.f32.vlgmr.msra.gmra.mrb[4].mxu1 %vm296_vm4, %v330_v55 }
 0x46a   :  { %v403_v56 = vpop.f32.mrb[2].mxu0 }
 0x46b   :  { %483 = vst.msk [vmem:[#allocation7] sm:$0xff] %vm133_vm2, %v403_v56  ;;  %v550_v57 = vpop.f32.mrb[3].mxu0 }
 0x46e   :  { %v479_v58 = vpop.f32.mrb[4].mxu1 }
 0x46f   :  { %484 = vst.msk [vmem:[#allocation7 + $0x8] sm:$0xff] %vm133_vm2, %v479_v58  ;;  %v555_v59 = vpop.f32.mrb[5].mxu1 }
 0x470   :  { %636 = shalt.err (!%p633_p6)
}
 0x471   :  { %s637_s12 = scalar_lea.hbm %s740_s2, 256 }
 0x472   :  { %p638_p7 = scmp.ne.s32.totalorder %s740_s2, %s637_s12  ;;  %p641_p8 = scmp.lt.u32.totalorder %s637_s12, %s740_s2 }
 0x474   :  { %p643_p9 = pnand %p641_p8, %p638_p7 }
 0x476   :  { %646 = shalt.err (!%p643_p9)
}
 0x477   :  { %496 = dma.vmem_to_hbm [thread:$0]  %s491_s8, 256, %s740_s2, [#allocation4], %s654_s19, %s654_s19, %s655_s20  }
 0x478   :  { %651 = dma.done.wait [#allocation4], 256  }
 0x479   :  { %652 = vsyncadd [#allocation4], 4294967040 }
 0x47a   :  { %500 = vsyncpa [#allocation3], 1 }
 0x47b   :  { %501 = vsyncpa [#allocation6], 1 }
 0x47c   :  { %502 = vsyncpa [#allocation4], 1 }

</bundles_post_ra>
